<compile_context>
chip_gen: v7x
topology: tpu7x:2x2x1
jax: 0.10.0
libtpu: 0.0.40
codegen_flags: <defaults>
</compile_context>

<pallas_src>
import functools

import jax
import jax.numpy as jnp
from jax.experimental import pallas as pl
from jax.experimental.pallas import tpu as pltpu

_LANES = 128
_SUBLANES = 8
_GRANULE = _LANES * _SUBLANES  # 1024-element (8x128) padding granule


def _round_up(a: int, b: int) -> int:
    return (a + b - 1) // b * b


def xornet_kernel(params_ref, x_ref, o_ref):
    """One dense batch slab: y = relu(x @ W1^T + b1) @ W2^T + b2 on the VPU.

    params_ref : SMEM (9,) f32 = [W1^T.flat (4), b1 (2), W2.flat (2), b2 (1)]
    x_ref      : VMEM (2, r_tile, 128) f32 -- batch fills sublanes AND lanes.
    o_ref      : VMEM (r_tile, 128) f32    -- fully dense, unmasked stores.
    """
    x0 = x_ref[0]  # (r_tile, 128), fully dense vregs
    x1 = x_ref[1]
    # Hidden layer: h_j = relu(x0 * W1T[0, j] + x1 * W1T[1, j] + b1[j])
    h0 = jnp.maximum(x0 * params_ref[0] + x1 * params_ref[2] + params_ref[4], 0.0)
    h1 = jnp.maximum(x0 * params_ref[1] + x1 * params_ref[3] + params_ref[5], 0.0)
    # Output layer: y = h0 * W2[0,0] + h1 * W2[0,1] + b2
    o_ref[...] = (h0 * params_ref[6] + h1 * params_ref[7] + params_ref[8]).astype(
        o_ref.dtype
    )


@functools.partial(jax.jit, static_argnames=("max_rows",))
def xornet_forward(x, w1, b1, w2, b2, *, max_rows: int = 2048):
    """Forward pass matching XORNet.forward.

    x  : (N, 2) float32
    w1 : (2, 2) float32  (torch layout: out x in)
    b1 : (2,)   float32
    w2 : (1, 2) float32  (torch layout: out x in)
    b2 : (1,)   float32
    returns (N, 1) float32
    """
    n = x.shape[0]
    if n == 0:
        return jnp.zeros((0, 1), jnp.float32)

    # Pad the batch to a 1024-element (8x128) granule, independent of the tile.
    n_pad = _round_up(n, _GRANULE)
    n_rows = n_pad // _LANES  # multiple of 8

    # Tile selection: at least 2 grid steps when there is enough work (so the
    # "parallel" axis feeds both v7x TensorCores), capped at max_rows rows
    # (~256K elems, ~3 MiB/block, ~6 MiB double-buffered -> safe on 64 MiB/TC).
    r_tile = min(max_rows, _round_up(max(1, (n_rows + 1) // 2), _SUBLANES))
    n_rows_pad = _round_up(n_rows, r_tile)
    num_tiles = n_rows_pad // r_tile

    # Dense (2, rows, 128) layout; pad-of-transpose fuses under jit (no
    # zeros+scatter pass). Padded elements produce finite garbage that is
    # sliced off below.
    xT = jnp.pad(x.astype(jnp.float32).T, ((0, 0), (0, n_rows_pad * _LANES - n)))
    x3 = xT.reshape(2, n_rows_pad, _LANES)

    # Pack the 9 scalars of the whole network into one SMEM-resident vector.
    params = jnp.concatenate(
        [
            w1.astype(jnp.float32).T.reshape(-1),  # W1^T, (in, out) flattened
            b1.astype(jnp.float32).reshape(-1),
            w2.astype(jnp.float32).reshape(-1),
            b2.astype(jnp.float32).reshape(-1),
        ]
    )  # (9,)

    out = pl.pallas_call(
        xornet_kernel,
        out_shape=jax.ShapeDtypeStruct((n_rows_pad, _LANES), jnp.float32),
        grid=(num_tiles,),
        in_specs=[
            pl.BlockSpec(memory_space=pltpu.MemorySpace.SMEM),       # params, whole array
            pl.BlockSpec((2, r_tile, _LANES), lambda i: (0, i, 0)),  # dense batch slab
        ],
        out_specs=pl.BlockSpec((r_tile, _LANES), lambda i: (i, 0)),  # dense output slab
        compiler_params=pltpu.CompilerParams(
            dimension_semantics=("parallel",),  # shard tiles across TCs on v7x
            vmem_limit_bytes=32 << 20,          # plenty of headroom on v5e/v6e/v7x
        ),
    )(params, x3)

    return out.reshape(-1)[:n].reshape(n, 1)


def init_params(key):
    """Deterministic init mimicking nn.Linear defaults (U[-1/sqrt(fan_in), +]),
    stored in torch layout: weight is (out_features, in_features)."""
    k1, k2, k3, k4 = jax.random.split(key, 4)
    bound = 1.0 / jnp.sqrt(2.0)  # fan_in = 2 for both layers
    w1 = jax.random.uniform(k1, (2, 2), jnp.float32, -bound, bound)
    b1 = jax.random.uniform(k2, (2,), jnp.float32, -bound, bound)
    w2 = jax.random.uniform(k3, (1, 2), jnp.float32, -bound, bound)
    b2 = jax.random.uniform(k4, (1,), jnp.float32, -bound, bound)
    return w1, b1, w2, b2


if __name__ == "__main__":
    key = jax.random.PRNGKey(0)
    kx, kp, kx2 = jax.random.split(key, 3)
    w1, b1, w2, b2 = init_params(kp)

    # Small XOR-style batch (single tile path).
    n = 8
    x = jax.random.uniform(kx, (n, 2), jnp.float32)
    out = jax.block_until_ready(xornet_forward(x, w1, b1, w2, b2))
    ref = jnp.maximum(x @ w1.T + b1, 0.0) @ w2.T + b2
    assert out.shape == (n, 1)
    assert jnp.allclose(out, ref, atol=1e-5, rtol=1e-5)

    # Moderately larger batch (exercises padding + multi-tile parallel grid).
    n2 = 3000
    x2 = jax.random.uniform(kx2, (n2, 2), jnp.float32)
    out2 = jax.block_until_ready(xornet_forward(x2, w1, b1, w2, b2))
    ref2 = jnp.maximum(x2 @ w1.T + b1, 0.0) @ w2.T + b2
    assert out2.shape == (n2, 1)
    assert jnp.allclose(out2, ref2, atol=1e-5, rtol=1e-5)

    print("KERNEL_OK")
</pallas_src>

<mosaic_0001>
module attributes {stable_mosaic.version = 11 : i64} {
  func.func @xornet_kernel(%arg0: i32, %arg1: memref<9xf32, #tpu.memory_space<smem>>, %arg2: memref<2x8x128xf32, #tpu.memory_space<vmem>>, %arg3: memref<8x128xf32, #tpu.memory_space<vmem>>) attributes {dimension_semantics = [#tpu.dimension_semantics<parallel>], iteration_bounds = array<i64: 1>, scalar_prefetch = 0 : i64, scratch_operands = 0 : i64, tpu.core_type = #tpu.core_type<tc>, window_params = [{transform_indices = @transform_0, window_bounds = array<i64: 9>}, {transform_indices = @transform_1, window_bounds = array<i64: 2, 8, 128>}, {transform_indices = @transform_2, window_bounds = array<i64: 8, 128>}]} {
    %c0 = arith.constant 0 : index
    %c0_0 = arith.constant 0 : index
    %c0_1 = arith.constant 0 : index
    %0 = vector.load %arg2[%c0, %c0_0, %c0_1] : memref<2x8x128xf32, #tpu.memory_space<vmem>>, vector<1x8x128xf32>
    %1 = vector.shape_cast %0 : vector<1x8x128xf32> to vector<8x128xf32>
    %c1 = arith.constant 1 : index
    %c0_2 = arith.constant 0 : index
    %c0_3 = arith.constant 0 : index
    %2 = vector.load %arg2[%c1, %c0_2, %c0_3] : memref<2x8x128xf32, #tpu.memory_space<vmem>>, vector<1x8x128xf32>
    %3 = vector.shape_cast %2 : vector<1x8x128xf32> to vector<8x128xf32>
    %c0_4 = arith.constant 0 : index
    %4 = memref.load %arg1[%c0_4] : memref<9xf32, #tpu.memory_space<smem>>
    %5 = vector.broadcast %4 : f32 to vector<8x128xf32>
    %6 = arith.mulf %1, %5 : vector<8x128xf32>
    %c2 = arith.constant 2 : index
    %7 = memref.load %arg1[%c2] : memref<9xf32, #tpu.memory_space<smem>>
    %8 = vector.broadcast %7 : f32 to vector<8x128xf32>
    %9 = arith.mulf %3, %8 : vector<8x128xf32>
    %10 = arith.addf %6, %9 : vector<8x128xf32>
    %c4 = arith.constant 4 : index
    %11 = memref.load %arg1[%c4] : memref<9xf32, #tpu.memory_space<smem>>
    %12 = vector.broadcast %11 : f32 to vector<8x128xf32>
    %13 = arith.addf %10, %12 : vector<8x128xf32>
    %cst = arith.constant 0.000000e+00 : f32
    %14 = vector.broadcast %cst : f32 to vector<8x128xf32>
    %15 = arith.maximumf %13, %14 : vector<8x128xf32>
    %c1_5 = arith.constant 1 : index
    %16 = memref.load %arg1[%c1_5] : memref<9xf32, #tpu.memory_space<smem>>
    %17 = vector.broadcast %16 : f32 to vector<8x128xf32>
    %18 = arith.mulf %1, %17 : vector<8x128xf32>
    %c3 = arith.constant 3 : index
    %19 = memref.load %arg1[%c3] : memref<9xf32, #tpu.memory_space<smem>>
    %20 = vector.broadcast %19 : f32 to vector<8x128xf32>
    %21 = arith.mulf %3, %20 : vector<8x128xf32>
    %22 = arith.addf %18, %21 : vector<8x128xf32>
    %c5 = arith.constant 5 : index
    %23 = memref.load %arg1[%c5] : memref<9xf32, #tpu.memory_space<smem>>
    %24 = vector.broadcast %23 : f32 to vector<8x128xf32>
    %25 = arith.addf %22, %24 : vector<8x128xf32>
    %cst_6 = arith.constant 0.000000e+00 : f32
    %26 = vector.broadcast %cst_6 : f32 to vector<8x128xf32>
    %27 = arith.maximumf %25, %26 : vector<8x128xf32>
    %c6 = arith.constant 6 : index
    %28 = memref.load %arg1[%c6] : memref<9xf32, #tpu.memory_space<smem>>
    %29 = vector.broadcast %28 : f32 to vector<8x128xf32>
    %30 = arith.mulf %15, %29 : vector<8x128xf32>
    %c7 = arith.constant 7 : index
    %31 = memref.load %arg1[%c7] : memref<9xf32, #tpu.memory_space<smem>>
    %32 = vector.broadcast %31 : f32 to vector<8x128xf32>
    %33 = arith.mulf %27, %32 : vector<8x128xf32>
    %34 = arith.addf %30, %33 : vector<8x128xf32>
    %c8 = arith.constant 8 : index
    %35 = memref.load %arg1[%c8] : memref<9xf32, #tpu.memory_space<smem>>
    %36 = vector.broadcast %35 : f32 to vector<8x128xf32>
    %37 = arith.addf %34, %36 : vector<8x128xf32>
    %c0_7 = arith.constant 0 : index
    %c0_8 = arith.constant 0 : index
    %38 = vector.load %arg3[%c0_7, %c0_8] : memref<8x128xf32, #tpu.memory_space<vmem>>, vector<8x128xf32>
    tpu.vector_store %arg3[%c0_7, %c0_8], %37 {strides = array<i32>} : memref<8x128xf32, #tpu.memory_space<vmem>>, vector<8x128xf32>,
    return
  }
  func.func @transform_0(%arg0: i32) -> i32 {
    %c0_i32 = arith.constant 0 : i32
    %c0_i32_0 = arith.constant 0 : i32
    return %c0_i32 : i32
  }
  func.func @transform_1(%arg0: i32) -> (i32, i32, i32) {
    %c0_i32 = arith.constant 0 : i32
    %c0_i32_0 = arith.constant 0 : i32
    %c0_i32_1 = arith.constant 0 : i32
    return %c0_i32, %arg0, %c0_i32_0 : i32, i32, i32
  }
  func.func @transform_2(%arg0: i32) -> (i32, i32) {
    %c0_i32 = arith.constant 0 : i32
    %c0_i32_0 = arith.constant 0 : i32
    return %arg0, %c0_i32 : i32, i32
  }
}

</mosaic_0001>

<bundles_post_ra>
// kernel: xornet_forward.1
= control target key start
LH: loop header
LB: loop body
LE: loop exit
PB: predicated region body
PF: predicated region fallthrough
CT: control target
= control target key end

     0   :  { %7 = vsyncpa [#allocation3], 0  ;;  %s117_s0 = inlined_call_operand.vmem [shape: f32[9], index: 0, kind: input, shape index: {}]   ;;  %s118_s1 = inlined_call_operand.vmem [shape: f32[2,8,128], index: 1, kind: input, shape index: {}]   ;;  %s119_s2 = inlined_call_operand.vmem [shape: f32[8,128], index: 2, kind: output, shape index: {}]  }
   0x1   :  { %s14_s11 = sshll.u32 %s117_s0, 4  ;;  %s15_s11 = int_to_ptr.vmem [resolvable:$true] %s14_s11 }
   0x2   :  { %s75_s12 = scalar_lea.vmem %s15_s11, 16  ;;  %p80_p1 = scmp.lt.s32.totalorder %s15_s11, %s15_s11 }
   0x3   :  { %p76_p0 = scmp.ne.s32.totalorder %s15_s11, %s75_s12  ;;  %p81_p2 = scmp.lt.s32.totalorder %s75_s12, %s75_s12 }
   0x5   :  { %p82_p3 = por %p81_p2, %p80_p1 }
   0x7   :  { %p83_p4 = pnand %p82_p3, %p76_p0 }
   0x9   :  { %86 = shalt.err (!%p83_p4)
}
   0xa   :  { %s89_s13 = smov [#allocation2]  }
   0xb   :  { %17 = dma.vmem_to_smem %s15_s11, 16, %s89_s13, [#allocation3]  }
   0xc   :  { %87 = dma.done.wait [#allocation3], 16  }
   0xd   :  { %88 = vsyncadd [#allocation3], 4294967280 }
   0xe   :  { %23 = sfence }
   0xf   :  { %s27_s14 = sld [smem:[#allocation2]]  ;;  %s66_s15 = sld [smem:[#allocation2 + $0x2]]  ;;  %v24_v0 = vld [vmem:[%s118_s1] sm:$0xff]  ;;  %v65_v1 = vld [vmem:[%s118_s1 + $0x8] sm:$0xff] }
  0x10   :  { %s67_s16 = sld [smem:[#allocation2 + $0x4]]  ;;  %s68_s17 = sld [smem:[#allocation2 + $0x1]] }
  0x11   :  { %s69_s18 = sld [smem:[#allocation2 + $0x3]]  ;;  %s70_s19 = sld [smem:[#allocation2 + $0x5]] }
  0x12   :  { %s71_s23 = sld [smem:[#allocation2 + $0x6]]  ;;  %s72_s24 = sld [smem:[#allocation2 + $0x7]] }
  0x13   :  { %s73_s25 = sld [smem:[#allocation2 + $0x8]] }
  0x15   :  { %v28_v2 = vstv %s27_s14  ;;  %v31_v3 = vstv %s66_s15 }
  0x16   :  { %v29_v4 = vmul.f32 %v28_v2, %v24_v0  ;;  %v32_v5 = vmul.f32 %v65_v1, %v31_v3  ;;  %v39_v6 = vstv %s68_s17  ;;  %v35_v7 = vstv %s67_s16 }
  0x17   :  { %v40_v8 = vmul.f32 %v39_v6, %v24_v0  ;;  %v42_v9 = vstv %s69_s18  ;;  %v46_v12 = vstv %s70_s19 }
  0x18   :  { %v33_v10 = vadd.f32 %v32_v5, %v29_v4  ;;  %v43_v11 = vmul.f32 %v65_v1, %v42_v9  ;;  %v50_v15 = vstv %s71_s23  ;;  %v53_v18 = vstv %s72_s24 }
  0x19   :  { %v57_v22 = vstv %s73_s25 }
  0x1a   :  { %v36_v13 = vadd.f32 %v35_v7, %v33_v10  ;;  %v44_v14 = vadd.f32 %v43_v11, %v40_v8 }
  0x1c   :  { %v37_v16 = vmax.f32 %v36_v13, 0.0  ;;  %v47_v17 = vadd.f32 %v46_v12, %v44_v14 }
  0x1e   :  { %v48_v19 = vmax.f32 %v47_v17, 0.0  ;;  %v51_v20 = vmul.f32 %v50_v15, %v37_v16 }
  0x20   :  { %v54_v21 = vmul.f32 %v53_v18, %v48_v19 }
  0x22   :  { %v55_v23 = vadd.f32 %v54_v21, %v51_v20 }
  0x24   :  { %v58_v24 = vadd.f32 %v57_v22, %v55_v23 }
  0x26   :  { %59 = vst [vmem:[%s119_s2] sm:$0xff] %v58_v24 }
  0x27   :  { %64 = vsyncpa [#allocation3], 1 }

</bundles_post_ra>
